<compile_context>
chip_gen: v5e
topology: v5e:2x2
jax: 0.10.0
libtpu: 0.0.40
codegen_flags: <defaults>
</compile_context>

<pallas_src>
import math
import jax
import jax.numpy as jnp
from jax import lax
from jax.experimental import pallas as pl
from jax.experimental.pallas import tpu as pltpu

_INV_SQRT2 = 1.0 / math.sqrt(2.0)


def _gelu_exact(x):
    # nn.GELU() default = exact erf formulation (erf lowers to the EUP slot).
    return 0.5 * x * (1.0 + lax.erf(x * _INV_SQRT2))


def _aux_pred_kernel(x_ref, w12t_ref, b12_ref, wht_ref, bh_ref, out_ref):
    """One (batch, token-tile) grid step; channels on sublanes, tokens on lanes.

    x_ref   : (F_aux, tl)   bf16 activation tile (native NCL slice)
    w12t_ref: (E, F_aux)    f32  folded conv1@conv2, transposed
    b12_ref : (E, 1)        f32
    wht_ref : (2*out, E)    f32  folded pred/logsig heads, concatenated+transposed
    bh_ref  : (2*out, 1)    f32
    out_ref : (2*out, tl)   f32  rows [:out] = mu, rows [out:] = logsig
    """
    # Embedding: gelu(W12^T @ x + b12).  bf16 x is promoted to f32 for the dot
    # (HBM read is what mattered; the MXU is idle at these channel counts).
    h = jnp.dot(w12t_ref[...], x_ref[...], preferred_element_type=jnp.float32)
    h = _gelu_exact(h + b12_ref[...])
    # Both heads in one lane-dense matmul + one lane-dense store.
    out = jnp.dot(wht_ref[...], h, preferred_element_type=jnp.float32) + bh_ref[...]
    out_ref[...] = out.astype(out_ref.dtype)


def fold_params(params):
    """One-time offline fold of the activation-free linear chains (in f32).

    Returns (w12t, b12_col, wheadt, bhead_col) ready for the kernel:
      w12t   (E, F_aux), b12_col (E, 1), wheadt (2*out, E), bhead_col (2*out, 1)
    """
    (w1, b1, w2, b2, wp1, bp1, wp2, bp2, wl1, bl1, wl2, bl2) = params
    f32 = jnp.float32
    w12 = w1.astype(f32) @ w2.astype(f32)                       # (F_aux, E)
    b12 = b1.astype(f32) @ w2.astype(f32) + b2.astype(f32)      # (1, E)
    wmu = wp1.astype(f32) @ wp2.astype(f32)                     # (E, out)
    bmu = bp1.astype(f32) @ wp2.astype(f32) + bp2.astype(f32)   # (1, out)
    wls = wl1.astype(f32) @ wl2.astype(f32)
    bls = bl1.astype(f32) @ wl2.astype(f32) + bl2.astype(f32)
    whead = jnp.concatenate([wmu, wls], axis=1)                 # (E, 2*out)
    bhead = jnp.concatenate([bmu, bls], axis=1)                 # (1, 2*out)
    # Transpose for channels-on-sublanes / tokens-on-lanes compute.
    return (jnp.transpose(w12),      # (E, F_aux)
            jnp.transpose(b12),      # (E, 1)
            jnp.transpose(whead),    # (2*out, E)
            jnp.transpose(bhead))    # (2*out, 1)


def _pick_token_tile(L, target):
    """Largest multiple of 128 that divides L and is <= target; else full L."""
    if L % 128 != 0:
        return L                          # full-extent last dim is always legal
    tl = max(128, min(L, (target // 128) * 128))
    while L % tl != 0:
        tl -= 128
    return tl


def pure_aux_pred(aux_in, folded_params, *, token_tile=1024):
    """aux_in: (B, features_aux, L).  Returns (mu, logsig), each (B, features_d//2, L) f32."""
    w12t, b12c, wheadt, bheadc = folded_params
    B, F_aux, L = aux_in.shape
    E = w12t.shape[0]
    two_out = wheadt.shape[0]
    out_dim = two_out // 2

    tl = _pick_token_tile(L, token_tile)
    grid = (B, L // tl)

    # bf16 activations halve the dominant HBM read; compute stays f32 in-kernel.
    x = aux_in if aux_in.dtype == jnp.bfloat16 else aux_in.astype(jnp.bfloat16)

    const = lambda shape: pl.BlockSpec(shape, lambda b, l: (0, 0))  # VMEM-resident

    out = pl.pallas_call(
        _aux_pred_kernel,
        out_shape=jax.ShapeDtypeStruct((B, two_out, L), jnp.float32),
        grid_spec=pltpu.PrefetchScalarGridSpec(
            num_scalar_prefetch=0,
            grid=grid,
            in_specs=[
                pl.BlockSpec((None, F_aux, tl), lambda b, l: (b, 0, l)),  # x (NCL)
                const((E, F_aux)),       # W12^T
                const((E, 1)),           # b12
                const((two_out, E)),     # W_heads^T
                const((two_out, 1)),     # b_heads
            ],
            out_specs=pl.BlockSpec((None, two_out, tl), lambda b, l: (b, 0, l)),
        ),
        compiler_params=pltpu.CompilerParams(
            dimension_semantics=("parallel", "parallel")),
    )(x, w12t, b12c, wheadt, bheadc)

    # Concatenated head output -> (mu, logsig); already (B, C_out, L) like PyTorch.
    return out[:, :out_dim, :], out[:, out_dim:, :]


def init_params(key, features_aux, embed_aux, features_d):
    """Deterministic synthetic init.  Weights stored as (in, out); biases as (1, out)."""
    dims = [
        (features_aux, embed_aux),           # aux_embedding1
        (embed_aux, embed_aux),              # aux_embedding2
        (embed_aux, features_aux * 2),       # pred1
        (features_aux * 2, features_d // 2), # pred2
        (embed_aux, features_aux * 2),       # logsig1
        (features_aux * 2, features_d // 2), # logsig2
    ]
    params = []
    for d_in, d_out in dims:
        key, kw, kb = jax.random.split(key, 3)
        scale = 1.0 / math.sqrt(d_in)
        w = jax.random.uniform(kw, (d_in, d_out), jnp.float32, -scale, scale)
        b = jax.random.uniform(kb, (1, d_out), jnp.float32, -scale, scale)
        params += [w, b]
    return tuple(params)


def _reference(aux_in, params):
    """Unfolded f32 reference matching the PyTorch forward (dropout = identity)."""
    (w1, b1, w2, b2, wp1, bp1, wp2, bp2, wl1, bl1, wl2, bl2) = params
    x = jnp.transpose(aux_in, (0, 2, 1)).astype(jnp.float32)   # (B, L, F_aux)
    h = x @ w1 + b1                 # aux_embedding1 (k=1 conv == per-position linear)
    h = h @ w2 + b2                 # aux_embedding2
    h = _gelu_exact(h)
    mu = (h @ wp1 + bp1) @ wp2 + bp2
    ls = (h @ wl1 + bl1) @ wl2 + bl2
    return jnp.transpose(mu, (0, 2, 1)), jnp.transpose(ls, (0, 2, 1))


if __name__ == "__main__":
    # cfg: features_aux=4, embed_aux=32, features_d=16, dropout=0.1 (identity at eval)
    B, L = 2, 512
    FEATURES_AUX, EMBED_AUX, FEATURES_D = 4, 32, 16

    key = jax.random.PRNGKey(0)
    key, k_aux, k_x = jax.random.split(key, 3)
    aux_in = jax.random.normal(k_aux, (B, FEATURES_AUX, L), jnp.float32)
    x_in = jax.random.normal(k_x, (B, FEATURES_D, L), jnp.float32)  # unused by forward

    params = init_params(key, FEATURES_AUX, EMBED_AUX, FEATURES_D)
    folded = fold_params(params)          # one-time offline fold of the linear chains

    mu, logsig = pure_aux_pred(aux_in, folded, token_tile=1024)
    jax.block_until_ready((mu, logsig))

    assert mu.shape == (B, FEATURES_D // 2, L)
    assert logsig.shape == (B, FEATURES_D // 2, L)

    # Sanity check vs the unfolded f32 reference (loose tol: activations are bf16).
    mu_ref, ls_ref = _reference(aux_in, params)
    err = max(float(jnp.max(jnp.abs(mu - mu_ref))),
              float(jnp.max(jnp.abs(logsig - ls_ref))))
    assert err < 5e-2, f"max abs error vs reference too large: {err}"

    print("KERNEL_OK")
</pallas_src>

<mosaic_0001>
module attributes {stable_mosaic.version = 11 : i64} {
  func.func @_aux_pred_kernel(%arg0: i32, %arg1: i32, %arg2: memref<1x4x512xbf16, #tpu.memory_space<vmem>>, %arg3: memref<32x4xf32, #tpu.memory_space<vmem>>, %arg4: memref<32x1xf32, #tpu.memory_space<vmem>>, %arg5: memref<16x32xf32, #tpu.memory_space<vmem>>, %arg6: memref<16x1xf32, #tpu.memory_space<vmem>>, %arg7: memref<1x16x512xf32, #tpu.memory_space<vmem>>) attributes {dimension_semantics = [#tpu.dimension_semantics<parallel>, #tpu.dimension_semantics<parallel>], iteration_bounds = array<i64: 2, 1>, scalar_prefetch = 0 : i64, scratch_operands = 0 : i64, tpu.core_type = #tpu.core_type<tc>, window_params = [{transform_indices = @transform_0, window_bounds = array<i64: 1, 4, 512>}, {pipeline_mode = #tpu.pipeline_mode<synchronous>, transform_indices = @transform_1, window_bounds = array<i64: 32, 4>}, {pipeline_mode = #tpu.pipeline_mode<synchronous>, transform_indices = @transform_2, window_bounds = array<i64: 32, 1>}, {pipeline_mode = #tpu.pipeline_mode<synchronous>, transform_indices = @transform_3, window_bounds = array<i64: 16, 32>}, {pipeline_mode = #tpu.pipeline_mode<synchronous>, transform_indices = @transform_4, window_bounds = array<i64: 16, 1>}, {transform_indices = @transform_5, window_bounds = array<i64: 1, 16, 512>}]} {
    %c0 = arith.constant 0 : index
    %c0_0 = arith.constant 0 : index
    %0 = vector.load %arg3[%c0, %c0_0] : memref<32x4xf32, #tpu.memory_space<vmem>>, vector<32x4xf32>
    %c0_1 = arith.constant 0 : index
    %c0_2 = arith.constant 0 : index
    %c0_3 = arith.constant 0 : index
    %1 = vector.load %arg2[%c0_1, %c0_2, %c0_3] : memref<1x4x512xbf16, #tpu.memory_space<vmem>>, vector<1x4x512xbf16>
    %2 = vector.shape_cast %1 : vector<1x4x512xbf16> to vector<4x512xbf16>
    %cst = arith.constant dense<0.000000e+00> : vector<32x512xf32>
    %3 = tpu.matmul %0, %2, %cst {dimension_numbers = #tpu.dot_dimension_numbers<[1], [0], [0], [1], [0, 0, 1, 1], [], []>} : vector<32x4xf32>, vector<4x512xbf16>, vector<32x512xf32> -> vector<32x512xf32>
    %c0_4 = arith.constant 0 : index
    %c0_5 = arith.constant 0 : index
    %4 = vector.load %arg4[%c0_4, %c0_5] : memref<32x1xf32, #tpu.memory_space<vmem>>, vector<32x1xf32>
    %5 = vector.broadcast %4 : vector<32x1xf32> to vector<32x512xf32>
    %6 = arith.addf %3, %5 : vector<32x512xf32>
    %cst_6 = arith.constant 5.000000e-01 : f32
    %7 = vector.broadcast %cst_6 : f32 to vector<32x512xf32>
    %8 = arith.mulf %7, %6 : vector<32x512xf32>
    %cst_7 = arith.constant 0.707106769 : f32
    %9 = vector.broadcast %cst_7 : f32 to vector<32x512xf32>
    %10 = arith.mulf %6, %9 : vector<32x512xf32>
    %11 = math.erf %10 : vector<32x512xf32>
    %cst_8 = arith.constant 1.000000e+00 : f32
    %12 = vector.broadcast %cst_8 : f32 to vector<32x512xf32>
    %13 = arith.addf %12, %11 : vector<32x512xf32>
    %14 = arith.mulf %8, %13 : vector<32x512xf32>
    %c0_9 = arith.constant 0 : index
    %c0_10 = arith.constant 0 : index
    %15 = vector.load %arg5[%c0_9, %c0_10] : memref<16x32xf32, #tpu.memory_space<vmem>>, vector<16x32xf32>
    %cst_11 = arith.constant dense<0.000000e+00> : vector<16x512xf32>
    %16 = tpu.matmul %15, %14, %cst_11 {dimension_numbers = #tpu.dot_dimension_numbers<[1], [0], [0], [1], [0, 0, 1, 1], [], []>} : vector<16x32xf32>, vector<32x512xf32>, vector<16x512xf32> -> vector<16x512xf32>
    %c0_12 = arith.constant 0 : index
    %c0_13 = arith.constant 0 : index
    %17 = vector.load %arg6[%c0_12, %c0_13] : memref<16x1xf32, #tpu.memory_space<vmem>>, vector<16x1xf32>
    %18 = vector.broadcast %17 : vector<16x1xf32> to vector<16x512xf32>
    %19 = arith.addf %16, %18 : vector<16x512xf32>
    %c0_14 = arith.constant 0 : index
    %c0_15 = arith.constant 0 : index
    %c0_16 = arith.constant 0 : index
    %20 = vector.load %arg7[%c0_14, %c0_15, %c0_16] : memref<1x16x512xf32, #tpu.memory_space<vmem>>, vector<1x16x512xf32>
    %21 = vector.shape_cast %20 : vector<1x16x512xf32> to vector<16x512xf32>
    %22 = vector.shape_cast %19 : vector<16x512xf32> to vector<1x16x512xf32>
    tpu.vector_store %arg7[%c0_14, %c0_15, %c0_16], %22 {strides = array<i32>} : memref<1x16x512xf32, #tpu.memory_space<vmem>>, vector<1x16x512xf32>,
    return
  }
  func.func @transform_0(%arg0: i32, %arg1: i32) -> (i32, i32, i32) {
    %c0_i32 = arith.constant 0 : i32
    %c0_i32_0 = arith.constant 0 : i32
    return %arg0, %c0_i32, %arg1 : i32, i32, i32
  }
  func.func @transform_1(%arg0: i32, %arg1: i32) -> (i32, i32) {
    %c0_i32 = arith.constant 0 : i32
    %c0_i32_0 = arith.constant 0 : i32
    %c0_i32_1 = arith.constant 0 : i32
    return %c0_i32, %c0_i32_0 : i32, i32
  }
  func.func @transform_2(%arg0: i32, %arg1: i32) -> (i32, i32) {
    %c0_i32 = arith.constant 0 : i32
    %c0_i32_0 = arith.constant 0 : i32
    %c0_i32_1 = arith.constant 0 : i32
    return %c0_i32, %c0_i32_0 : i32, i32
  }
  func.func @transform_3(%arg0: i32, %arg1: i32) -> (i32, i32) {
    %c0_i32 = arith.constant 0 : i32
    %c0_i32_0 = arith.constant 0 : i32
    %c0_i32_1 = arith.constant 0 : i32
    return %c0_i32, %c0_i32_0 : i32, i32
  }
  func.func @transform_4(%arg0: i32, %arg1: i32) -> (i32, i32) {
    %c0_i32 = arith.constant 0 : i32
    %c0_i32_0 = arith.constant 0 : i32
    %c0_i32_1 = arith.constant 0 : i32
    return %c0_i32, %c0_i32_0 : i32, i32
  }
  func.func @transform_5(%arg0: i32, %arg1: i32) -> (i32, i32, i32) {
    %c0_i32 = arith.constant 0 : i32
    %c0_i32_0 = arith.constant 0 : i32
    return %arg0, %c0_i32, %arg1 : i32, i32, i32
  }
}

</mosaic_0001>

<bundles_post_ra>
// kernel: tpu_custom_call.1
= control target key start
LH: loop header
LB: loop body
LE: loop exit
PB: predicated region body
PF: predicated region fallthrough
CT: control target
= control target key end

     0   :  { %10 = vsyncpa [#allocation3], 0  ;;  %s2371_s0 = inlined_call_operand.vmem [shape: bf16[2,4,512], index: 0, kind: input, shape index: {}]   ;;  %s2372_s1 = inlined_call_operand.vmem [shape: f32[32,4], index: 1, kind: input, shape index: {}]   ;;  %s2373_s2 = inlined_call_operand.vmem [shape: f32[32,1], index: 2, kind: input, shape index: {}]   ;;  %s2374_s3 = inlined_call_operand.vmem [shape: f32[16,32], index: 3, kind: input, shape index: {}]   ;;  %s2375_s4 = inlined_call_operand.vmem [shape: f32[16,1], index: 4, kind: input, shape index: {}]   ;;  %s2376_s5 = inlined_call_operand.hbm [shape: f32[2,16,512], index: 5, kind: output, shape index: {}]  }
   0x1   :  { %12 = vsyncpa [#allocation3 + $0x1], 0  ;;  %s1579_s18 = smov 0   ;;  %s1581_s19 = smov 0  }
   0x2   :  { %s1583_s20 = smov 0   ;;  %s1585_s21 = smov 0  }
   0x3   :  { %s1587_s22 = smov 0   ;;  %s1589_s23 = smov 0  }
   0x4 LB: > { %s1318_s24 = sadd.s32 4294967295, %s1544_s23   ;;  %s1319_s25 = sadd.s32 4294967294, %s1544_s23   ;;  %s1544_s23 = sphi %s1589_s23, %s18_s23   ;;  %s1540_s22 = sphi %s1587_s22, %s2448_s22   ;;  %s1536_s21 = sphi %s1585_s21, %s2447_s21   ;;  %s1532_s20 = sphi %s1583_s20, %s2446_s20   ;;  %s1528_s19 = sphi %s1581_s19, %s2445_s19   ;;  %s1524_s18 = sphi %s1579_s18, %s2444_s18  }
   0x5   : > { %s30_s26 = sadd.s32 1, %s1540_s22  ;;  %s151_s27 = sadd.s32 1, %s1532_s20 }
   0x6   : > { %p32_p0 = scmp.ge.s32.totalorder %s30_s26, 2  ;;  %p161_p1 = scmp.ne.s32.totalorder %s1532_s20, %s1528_s19 }
   0x7   : > { %p162_p2 = scmp.eq.s32.totalorder %s1318_s24, 1  ;;  %p167_p3 = scmp.ne.s32.totalorder %s1528_s19, %s1524_s18 }
   0x8   : > { %s2450_s26 = smov (%p32_p0, %s30_s26), 0  ;;  %p168_p5 = scmp.eq.s32.totalorder %s1319_s25, 1 }
   0x9   : > { %p1619_p4 = por %p162_p2, %p161_p1  ;;  %s146_s29 = ssub.s32 %s1540_s22, %s2450_s26 }
   0xa   : > { %p1322_p6 = scmp.ge.s32.totalorder %s1544_s23, 1  ;;  %p149_p7 = scmp.eq.s32.totalorder %s146_s29, 0 }
   0xb   : > { %p1626_p8 = por %p168_p5, %p167_p3  ;;  %p211_p9 = scmp.lt.s32.totalorder %s1544_s23, 3 }
   0xc   : > { %s1632_s6 = scalar_select %p149_p7, %s1532_s20, %s151_s27  }
   0xd   : > { %p212_p10 = pnand %p1322_p6, %p211_p9 }
   0xf   : > { %215 = sbr.rel (%p212_p10) target bundleno = 506 (0x1fa), region = 40 }
  0x14   : > { %p244_p11 = scmp.lt.s32.totalorder %s1536_s21, 1  ;;  %v261_v0 = vld [vmem:[%s2373_s2 + $0x8] sm:$0xff]  ;;  %v1546_v1 = vmov 0   ;;  %v263_v2 = vld [vmem:[%s2373_s2 + $0x18] sm:$0xff]  ;;  %v260_v4 = vld [vmem:[%s2373_s2] sm:$0xff]  ;;  %vm303_vm0 = vcmask 1041408  }
  0x15   : > { %1432 = vset.pattern.permute.xlu1 %v1546_v1  ;;  %1431 = vset.pattern.permute.xlu0 %v1546_v1  ;;  %v262_v5 = vld [vmem:[%s2373_s2 + $0x10] sm:$0xff]  ;;  %v255_v13 = vld [vmem:[%s2372_s1] sm:$0xff]  ;;  %vm290_vm1 = vcmask 31744   ;;  %v256_v15 = vld [vmem:[%s2372_s1 + $0x8] sm:$0xff]  ;;  %s240_s29 = sand.u32 1, %s1528_s19   ;;  %s1486_s25 = scalar_lea.hbm %s2376_s5, 128 }
  0x16   : > { %s245_s9 = scalar_select %p244_p11, %s1536_s21, 1  ;;  %271 = vperm.xlu1 %1432, %v261_v0   ;;  %1433 = vset.pattern.permute.xlu2 %v1546_v1  ;;  %v257_v16 = vld [vmem:[%s2372_s1 + $0x10] sm:$0xff]  ;;  %v258_v17 = vld [vmem:[%s2372_s1 + $0x18] sm:$0xff] }
  0x17   : > { %281 = vperm.xlu0 %1431, %v263_v2   ;;  %s1323_s7 = sshll.u32 %s240_s29, 6  ;;  %s1222_s15 = scalar_lea.sflag [#allocation3], %s240_s29 }
  0x18   : > { %s1371_s10 = sshll.u32 %s245_s9, 3  ;;  %s242_s8 = scalar_lea.vmem [#allocation2], %s1323_s7 }
  0x19   : > { %s251_s13 = scalar_lea.vmem %s2371_s0, %s1371_s10  ;;  %s1372_s9 = sshll.u32 %s1536_s21, 6 }
  0x1a   : > { %v259_v3 = vld [vmem:[%s251_s13] sm:$0xff]  ;;  %s1235_s12 = scalar_lea.hbm %s2376_s5, %s1372_s9  ;;  %s1236_s13 = sshll.u32 %s242_s8, 4  ;;  %s1237_s13 = int_to_ptr.vmem [resolvable:$true] %s1236_s13 }
  0x1b   : > { %285 = vst [vmem:[#allocation1] ss:$4 sm:$0xff] %v259_v3  ;;  %s1238_s14 = sshll.u32 %s1235_s12, 4  ;;  %s1239_s14 = int_to_ptr.hbm [resolvable:$true] %s1238_s14 }
  0x1c   : > { %s1480_s21 = sshra.s32 %s1239_s14, 4  ;;  %s1481_s21 = int_to_ptr.hbm [resolvable:$true] %s1480_s21 }
  0x1d   : > { %s1482_s16 = scalar_lea.hbm %s1481_s21, 64  ;;  %p1487_p1 = scmp.lt.s32.totalorder %s1481_s21, %s2376_s5 }
  0x1e   : > { %266 = vperm.xlu1 %1432, %v260_v4   ;;  %p1483_p12 = scmp.ne.s32.totalorder %s1481_s21, %s1482_s16  ;;  %p1488_p2 = scmp.lt.s32.totalorder %s1486_s25, %s1482_s16 }
  0x1f   : > { %276 = vperm.xlu0 %1431, %v262_v5  }
  0x20   : > { %p1484_p13 = pnand %p1483_p12, %p1619_p4  ;;  %p1489_p3 = por %p1488_p2, %p1487_p1 }
  0x22   : > { %v286_v6 = vld.sshfl [vmem:[#allocation1] sm:$0xff pattern:$0x73625140]  ;;  %v287_v7 = vld.sshfl [vmem:[#allocation1 + $0x8] sm:$0xff pattern:$0x73625140]  ;;  %p1485_p0 = pneg %p1484_p13 }
  0x23   : > { %v304_v8 = vsel %vm303_vm0, %v286_v6, 0  ;;  %v306_v9 = vsel %vm303_vm0, %v287_v7, 0  ;;  %v288_v10 = vld.sshfl [vmem:[#allocation1 + $0x10] sm:$0xff pattern:$0x73625140] }
  0x24   : > { %319 = vmatpush.bf16.msra.mxu0 %v304_v8  ;;  %340 = vmatpush.bf16.msra.mxu1 %v306_v9  ;;  %v308_v11 = vsel %vm303_vm0, %v288_v10, 0  ;;  %v289_v12 = vld.sshfl [vmem:[#allocation1 + $0x18] sm:$0xff pattern:$0x73625140]  ;;  %p1490_p5 = pnand %p1489_p3, %p1485_p0 }
  0x25   : > { %361 = vmatpush.bf16.msra.mxu2 %v308_v11  ;;  %v310_v14 = vsel %vm303_vm0, %v289_v12, 0 }
  0x26   : > { %382 = vmatpush.bf16.msra.mxu3 %v310_v14 }
  0x27   : > { %1326 = vmatmul.msk.f32.vlgmr.msra.gmra.mxu0 %vm290_vm1, %v255_v13  ;;  %1330 = vmatmul.msk.f32.vlgmr.msra.gmra.mxu1 %vm290_vm1, %v255_v13 }
  0x28   : > { %1334 = vmatmul.msk.f32.vlgmr.msra.gmra.mxu2 %vm290_vm1, %v255_v13 }
  0x29   : > { %1338 = vmatmul.msk.f32.vlgmr.msra.gmra.mxu3 %vm290_vm1, %v255_v13 }
  0x2f   : > { %1327 = vmatmul.msk.f32.gmra.mxu0 %vm290_vm1, %v256_v15  ;;  %1331 = vmatmul.msk.f32.gmra.mxu1 %vm290_vm1, %v256_v15 }
  0x30   : > { %1335 = vmatmul.msk.f32.gmra.mxu2 %vm290_vm1, %v256_v15 }
  0x31   : > { %1339 = vmatmul.msk.f32.gmra.mxu3 %vm290_vm1, %v256_v15 }
  0x37   : > { %1328 = vmatmul.msk.f32.gmra.mxu0 %vm290_vm1, %v257_v16  ;;  %1332 = vmatmul.msk.f32.gmra.mxu1 %vm290_vm1, %v257_v16 }
  0x38   : > { %1336 = vmatmul.msk.f32.gmra.mxu2 %vm290_vm1, %v257_v16 }
  0x39   : > { %1340 = vmatmul.msk.f32.gmra.mxu3 %vm290_vm1, %v257_v16 }
  0x3f   : > { %1329 = vmatmul.msk.f32.gmra.mxu0 %vm290_vm1, %v258_v17  ;;  %1333 = vmatmul.msk.f32.gmra.mxu1 %vm290_vm1, %v258_v17 }
  0x40   : > { %1337 = vmatmul.msk.f32.gmra.mxu2 %vm290_vm1, %v258_v17 }
  0x41   : > { %1341 = vmatmul.msk.f32.gmra.mxu3 %vm290_vm1, %v258_v17 }
  0x88   : > { %v272_v18 = vpop.permute.xlu1 %271 }
  0x89   : > { %v1714_v44 = vpop.permute.xlu0 %281 }
  0x90   : > { %v267_v19 = vpop.permute.xlu1 %266 }
  0x91   : > { %v277_v5 = vpop.permute.xlu0 %276 }
  0xa4   : > { %v321_v20 = vpop.f32.mrf.mxu0  ;;  %v342_v21 = vpop.f32.mrf.mxu1 }
  0xa5   : > { %v1679_v22 = vadd.f32 %v321_v20, %v267_v19  ;;  %v1681_v23 = vadd.f32 %v342_v21, %v267_v19 }
  0xa7   : > { %v1684_v24 = vmul.f32 0.70710677, %v1679_v22  ;;  %v1687_v25 = vmul.f32 0.70710677, %v1681_v23 }
  0xa9   : > { %v428_v26 = vmul.f32 %v1684_v24, %v1684_v24  ;;  %v468_v27 = vmul.f32 %v1687_v25, %v1687_v25 }
  0xab   : > { %v1693_v28 = vmin.f32 %v428_v26, 16.0  ;;  %v1695_v29 = vmin.f32 %v468_v27, 16.0  ;;  %v363_v30 = vpop.f32.mrf.mxu2 }
  0xac   : > { %v324_v31 = vpop.f32.mrf.mxu0  ;;  %v345_v35 = vpop.f32.mrf.mxu1  ;;  %v1701_v36 = vadd.f32 %v363_v30, %v267_v19 }
  0xad   : > { %v430_v32 = vmul.f32 2.1237322e-06, %v1693_v28  ;;  %v470_v33 = vmul.f32 2.1237322e-06, %v1695_v29  ;;  %v1699_v34 = vadd.f32 %v324_v31, %v272_v18  ;;  %v1703_v37 = vadd.f32 %v345_v35, %v272_v18  ;;  %v384_v41 = vpop.f32.mrf.mxu3 }
  0xae   : > { %2392 = vst [vmem:[#allocation5_spill] sm:$0xff] %v1701_v36  ;;  %v1712_v43 = vmul.f32 0.70710677, %v1701_v36  ;;  %v1721_v49 = vadd.f32 %v384_v41, %v267_v19 }
  0xaf   : > { %v431_v38 = vadd.f32 0.00028619796, %v430_v32  ;;  %v1706_v39 = vmul.f32 0.70710677, %v1699_v34  ;;  %v471_v40 = vadd.f32 0.00028619796, %v470_v33 }
  0xb0   : > { %v1709_v42 = vmul.f32 0.70710677, %v1703_v37  ;;  %2393 = vst [vmem:[#allocation6_spill] sm:$0xff] %v1712_v43  ;;  %v508_v54 = vmul.f32 %v1712_v43, %v1712_v43  ;;  %v1735_v58 = vmul.f32 0.70710677, %v1721_v49 }
  0xb1   : > { %v588_v45 = vmul.f32 %v1706_v39, %v1706_v39  ;;  %v432_v48 = vmul.f32 %v431_v38, %v1693_v28  ;;  %2394 = vst [vmem:[#allocation7_spill] sm:$0xff] %v1721_v49  ;;  %v472_v51 = vmul.f32 %v471_v40, %v1695_v29 }
  0xb2   : > { %v628_v46 = vmul.f32 %v1709_v42, %v1709_v42  ;;  %2396 = vst [vmem:[#allocation9_spill] sm:$0xff] %v1735_v58  ;;  %v1740_v62 = vmin.f32 %v508_v54, 16.0  ;;  %v548_v4 = vmul.f32 %v1735_v58, %v1735_v58 }
  0xb3   : > { %v366_v47 = vpop.f32.mrf.mxu2  ;;  %v1723_v50 = vmin.f32 %v588_v45, 16.0  ;;  %v433_v57 = vadd.f32 0.0036580483, %v432_v48  ;;  %v473_v60 = vadd.f32 0.0036580483, %v472_v51 }
  0xb4   : > { %v1726_v52 = vmin.f32 %v628_v46, 16.0  ;;  %v1728_v53 = vadd.f32 %v366_v47, %v272_v18  ;;  %v327_v6 = vpop.f32.mrf.mxu0  ;;  %v510_v8 = vmul.f32 2.1237322e-06, %v1740_v62  ;;  %v1757_v15 = vmin.f32 %v548_v4, 16.0  ;;  %v348_v16 = vpop.f32.mrf.mxu1 }
  0xb5   : > { %v590_v55 = vmul.f32 2.1237322e-06, %v1723_v50  ;;  %v387_v2 = vpop.f32.mrf.mxu3  ;;  %v434_v3 = vmul.f32 %v433_v57, %v1693_v28  ;;  %v474_v7 = vmul.f32 %v473_v60, %v1695_v29  ;;  %v1755_v13 = vadd.f32 %v327_v6, %v277_v5 }
  0xb6   : > { %2395 = vst [vmem:[#allocation8_spill] sm:$0xff] %v1728_v53  ;;  %v630_v56 = vmul.f32 2.1237322e-06, %v1726_v52  ;;  %v1738_v61 = vmul.f32 0.70710677, %v1728_v53  ;;  %v1751_v11 = vadd.f32 %v387_v2, %v272_v18  ;;  %v1767_v30 = vadd.f32 %v348_v16, %v277_v5 }
  0xb7   : > { %v591_v59 = vadd.f32 0.00028619796, %v590_v55  ;;  %v435_v14 = vadd.f32 0.05243302, %v434_v3  ;;  %v475_v17 = vadd.f32 0.05243302, %v474_v7 }
  0xb8   : > { %2397 = vst [vmem:[#allocation10_spill] sm:$0xff] %v1738_v61  ;;  %v631_v0 = vadd.f32 0.00028619796, %v630_v56  ;;  %v668_v1 = vmul.f32 %v1738_v61, %v1738_v61  ;;  %v511_v19 = vadd.f32 0.00028619796, %v510_v8  ;;  %v1779_v46 = vmul.f32 0.5, %v1679_v22 }
  0xb9   : > { %v592_v63 = vmul.f32 %v591_v59, %v1723_v50  ;;  %2398 = vst [vmem:[#allocation11_spill] sm:$0xff] %v1751_v11  ;;  %v1761_v26 = vmul.f32 0.70710677, %v1751_v11  ;;  %v1765_v18 = vmul.f32 0.70710677, %v1755_v13  ;;  %v436_v31 = vmul.f32 %v435_v14, %v1693_v28 }
  0xba   : > { %v632_v10 = vmul.f32 %v631_v0, %v1726_v52  ;;  %v1753_v12 = vmin.f32 %v668_v1, 16.0  ;;  %v550_v32 = vmul.f32 2.1237322e-06, %v1757_v15  ;;  %v476_v33 = vmul.f32 %v475_v17, %v1695_v29 }
  0xbb   : > { %v593_v9 = vadd.f32 0.0036580483, %v592_v63  ;;  %2399 = vst [vmem:[#allocation12_spill] sm:$0xff] %v1761_v26  ;;  %v748_v35 = vmul.f32 %v1765_v18, %v1765_v18  ;;  %v512_v38 = vmul.f32 %v511_v19, %v1740_v62  ;;  %v708_v45 = vmul.f32 %v1761_v26, %v1761_v26  ;;  %v369_v54 = vpop.f32.mrf.mxu2 }
  0xbc   : > { %v633_v21 = vadd.f32 0.0036580483, %v632_v10  ;;  %v670_v27 = vmul.f32 2.1237322e-06, %v1753_v12  ;;  %v1784_v51 = vmul.f32 0.70710677, %v1767_v30  ;;  %v330_v6 = vpop.f32.mrf.mxu0 }
  0xbd   : > { %v594_v20 = vmul.f32 %v593_v9, %v1723_v50  ;;  %v1781_v48 = vmin.f32 %v748_v35, 16.0  ;;  %v437_v55 = vadd.f32 0.18741608, %v436_v31  ;;  %v1787_v56 = vmul.f32 0.5, %v1681_v23  ;;  %v390_v1 = vpop.f32.mrf.mxu3 }
  0xbe   : > { %v634_v41 = vmul.f32 %v633_v21, %v1726_v52  ;;  %v671_v47 = vadd.f32 0.00028619796, %v670_v27  ;;  %v551_v57 = vadd.f32 0.00028619796, %v550_v32  ;;  %v1790_v59 = vmul.f32 0.5, %v1699_v34 }
  0xbf   : > { %v595_v40 = vadd.f32 0.05243302, %v594_v20  ;;  %v477_v60 = vadd.f32 0.18741608, %v476_v33  ;;  %v1793_v63 = vmul.f32 0.5, %v1703_v37  ;;  %v788_v0 = vmul.f32 %v1784_v51, %v1784_v51  ;;  %v351_v33 = vpop.f32.mrf.mxu1 }
  0xc0   : > { %v750_v22 = vmul.f32 2.1237322e-06, %v1781_v48  ;;  %v513_v2 = vadd.f32 0.0036580483, %v512_v38  ;;  %v635_v3 = vadd.f32 0.05243302, %v634_v41  ;;  %v1800_v23 = vadd.f32 %v369_v54, %v277_v5 }
  0xc1   : > { %v1798_v4 = vmin.f32 %v708_v45, 16.0  ;;  %v596_v34 = vmul.f32 %v595_v40, %v1723_v50  ;;  %v672_v7 = vmul.f32 %v671_v47, %v1753_v12  ;;  %v1804_v37 = vmin.f32 %v788_v0, 16.0 }
  0xc2   : > { %2400 = vst [vmem:[#allocation13_spill] sm:$0xff] %v1800_v23  ;;  %v751_v8 = vadd.f32 0.00028619796, %v750_v22  ;;  %v438_v9 = vmul.f32 %v437_v55, %v1693_v28  ;;  %v552_v10 = vmul.f32 %v551_v57, %v1757_v15  ;;  %v1809_v14 = vmul.f32 0.70710677, %v1800_v23 }
  0xc3   : > { %v1811_v16 = vadd.f32 %v390_v1, %v277_v5  ;;  %v478_v17 = vmul.f32 %v477_v60, %v1695_v29  ;;  %v790_v20 = vmul.f32 2.1237322e-06, %v1804_v37  ;;  %v1817_v21 = vadd.f32 %v330_v6, %v1714_v44  ;;  %v372_v1 = vpop.f32.mrf.mxu2 }
  0xc4   : > { %v752_v19 = vmul.f32 %v751_v8, %v1781_v48  ;;  %v1820_v27 = vmul.f32 %v513_v2, %v1740_v62  ;;  %v710_v31 = vmul.f32 2.1237322e-06, %v1798_v4  ;;  %v828_v32 = vmul.f32 %v1809_v14, %v1809_v14 }
  0xc5   : > { %2401 = vst [vmem:[#allocation14_spill] sm:$0xff] %v1811_v16  ;;  %v1826_v5 = vmul.f32 0.70710677, %v1811_v16  ;;  %v597_v35 = vadd.f32 0.18741608, %v596_v34  ;;  %v636_v38 = vmul.f32 %v635_v3, %v1726_v52  ;;  %v1838_v0 = vadd.f32 %v351_v33, %v1714_v44 }
  0xc6   : > { %v673_v40 = vadd.f32 0.0036580483, %v672_v7  ;;  %v791_v41 = vadd.f32 0.00028619796, %v790_v20  ;;  %v753_v45 = vadd.f32 0.0036580483, %v752_v19 }
  0xc7   : > { %2402 = vst [vmem:[#allocation15_spill] sm:$0xff] %v1826_v5  ;;  %v1829_v47 = vmin.f32 %v828_v32, 16.0  ;;  %v868_v54 = vmul.f32 %v1826_v5, %v1826_v5  ;;  %v1834_v55 = vmul.f32 0.70710677, %v1817_v21  ;;  %v439_v57 = vadd.f32 1.1283791, %v438_v9 }
  0xc8   : > { %v479_v60 = vadd.f32 1.1283791, %v478_v17  ;;  %v792_v22 = vmul.f32 %v791_v41, %v1804_v37  ;;  %v711_v2 = vadd.f32 0.00028619796, %v710_v31  ;;  %v1845_v7 = vadd.f32 0.0036580483, %v552_v10 }
  0xc9   : > { %v830_v3 = vmul.f32 2.1237322e-06, %v1829_v47  ;;  %v1841_v6 = vmin.f32 %v868_v54, 16.0  ;;  %v908_v34 = vmul.f32 %v1834_v55, %v1834_v55  ;;  %v637_v8 = vadd.f32 0.18741608, %v636_v38  ;;  %v393_v38 = vpop.f32.mrf.mxu3 }
  0xca   : > { %2403 = vst [vmem:[#allocation16_spill] sm:$0xff] %v1845_v7  ;;  %v674_v9 = vmul.f32 %v673_v40, %v1753_v12  ;;  %v793_v17 = vadd.f32 0.0036580483, %v792_v22  ;;  %v598_v19 = vmul.f32 %v597_v35, %v1723_v50  ;;  %v754_v20 = vmul.f32 %v753_v45, %v1781_v48 }
  0xcb   : > { %v831_v32 = vadd.f32 0.00028619796, %v830_v3  ;;  %v1851_v31 = vadd.f32 %v372_v1, %v1714_v44  ;;  %v1854_v33 = vmul.f32 %v439_v57, %v1684_v24  ;;  %v870_v41 = vmul.f32 2.1237322e-06, %v1841_v6 }
  0xcc   : > { %v1857_v54 = vmin.f32 %v908_v34, 16.0  ;;  %v1860_v10 = vmul.f32 0.70710677, %v1838_v0  ;;  %v1863_v40 = vmul.f32 %v479_v60, %v1687_v25  ;;  %v712_v35 = vmul.f32 %v711_v2, %v1798_v4 }
  0xcd   : > { %2404 = vst [vmem:[#allocation17_spill] sm:$0xff] %v1851_v31  ;;  %v794_v45 = vmul.f32 %v793_v17, %v1804_v37  ;;  %v832_v22 = vmul.f32 %v831_v32, %v1829_v47  ;;  %v638_v24 = vmul.f32 %v637_v8, %v1726_v52  ;;  %v675_v57 = vadd.f32 0.05243302, %v674_v9 }
  0xce   : > { %v910_v1 = vmul.f32 2.1237322e-06, %v1857_v54  ;;  %v948_v3 = vmul.f32 %v1860_v10, %v1860_v10  ;;  %v599_v34 = vadd.f32 1.1283791, %v598_v19  ;;  %v755_v49 = vadd.f32 0.05243302, %v754_v20 }
  0xcf   : > { %v1873_v36 = vmul.f32 0.70710677, %v1851_v31  ;;  %v1876_v25 = vadd.f32 %v393_v38, %v1714_v44  ;;  %v1879_v60 = vmul.f32 0.5, %v1755_v13  ;;  %v871_v2 = vadd.f32 0.00028619796, %v870_v41 }
  0xd0   : > { %v911_v17 = vadd.f32 0.00028619796, %v910_v1  ;;  %v1881_v8 = vmin.f32 %v948_v3, 16.0  ;;  %v1884_v9 = vmul.f32 0.5, %v1767_v30  ;;  %v795_v32 = vadd.f32 0.05243302, %v794_v45 }
  0xd1   : > { %2405 = vst [vmem:[#allocation18_spill] sm:$0xff] %v1876_v25  ;;  %v833_v58 = vadd.f32 0.0036580483, %v832_v22  ;;  %v988_v19 = vmul.f32 %v1873_v36, %v1873_v36  ;;  %v676_v20 = vmul.f32 %v675_v57, %v1753_v12  ;;  %v713_v43 = vadd.f32 0.0036580483, %v712_v35 }
  0xd2   : > { %v912_v44 = vmul.f32 %v911_v17, %v1857_v54  ;;  %v950_v13 = vmul.f32 2.1237322e-06, %v1881_v8  ;;  %v639_v38 = vadd.f32 1.1283791, %v638_v24  ;;  %v756_v41 = vmul.f32 %v755_v49, %v1781_v48 }
  0xd3   : > { %v1892_v1 = vmin.f32 %v988_v19, 16.0  ;;  %v1895_v30 = vmul.f32 0.70710677, %v1876_v25  ;;  %v1898_v45 = vmul.f32 %v599_v34, %v1706_v39  ;;  %v872_v22 = vmul.f32 %v871_v2, %v1841_v6 }
  0xd4   : > { %v913_v3 = vadd.f32 0.0036580483, %v912_v44  ;;  %v951_v57 = vadd.f32 0.00028619796, %v950_v13  ;;  %v796_v35 = vmul.f32 %v795_v32, %v1804_v37  ;;  %v834_v17 = vmul.f32 %v833_v58, %v1829_v47 }
  0xd5   : > { %v990_v24 = vmul.f32 2.1237322e-06, %v1892_v1  ;;  %v1028_v49 = vmul.f32 %v1895_v30, %v1895_v30  ;;  %v677_v19 = vadd.f32 0.18741608, %v676_v20  ;;  %v921_v39 = vmul.f32 3.8918573e-05, %v1857_v54 }
  0xd6   : > { %v914_v11 = vmul.f32 %v913_v3, %v1857_v54  ;;  %v952_v26 = vmul.f32 %v951_v57, %v1881_v8  ;;  %v714_v34 = vmul.f32 %v713_v43, %v1798_v4  ;;  %v757_v2 = vadd.f32 0.18741608, %v756_v41 }
  0xd7   : > { %v991_v44 = vadd.f32 0.00028619796, %v990_v24  ;;  %v1910_v13 = vmin.f32 %v1028_v49, 16.0  ;;  %v1913_v58 = vmul.f32 %v639_v38, %v1709_v42  ;;  %v873_v32 = vadd.f32 0.0036580483, %v872_v22 }
  0xd8   : > { %v953_v53 = vadd.f32 0.0036580483, %v952_v26  ;;  %v922_v16 = vadd.f32 0.001143296, %v921_v39  ;;  %v797_v61 = vadd.f32 0.18741608, %v796_v35  ;;  %v1921_v24 = vmul.f32 %v677_v19, %v1753_v12 }
  0xd9   : > { %v835_v20 = vadd.f32 0.05243302, %v834_v17  ;;  %v992_v3 = vmul.f32 %v991_v44, %v1892_v1  ;;  %v1030_v57 = vmul.f32 2.1237322e-06, %v1910_v13  ;;  %v915_v5 = vadd.f32 0.05243302, %v914_v11 }
  0xda   : > { %v954_v25 = vmul.f32 %v953_v53, %v1881_v8  ;;  %v923_v43 = vmul.f32 %v922_v16, %v1857_v54  ;;  %v961_v41 = vmul.f32 3.8918573e-05, %v1881_v8  ;;  %2406 = vst [vmem:[#allocation19_spill] sm:$0xff] %v1921_v24  ;;  %v1923_v42 = vadd.f32 0.05243302, %v714_v34 }
  0xdb   : > { %v993_v26 = vadd.f32 0.0036580483, %v992_v3  ;;  %v1031_v38 = vadd.f32 0.00028619796, %v1030_v57  ;;  %v758_v22 = vmul.f32 %v757_v2, %v1781_v48  ;;  %v874_v35 = vmul.f32 %v873_v32, %v1841_v6 }
  0xdc   : > { %2407 = vst [vmem:[#allocation20_spill] sm:$0xff] %v1923_v42  ;;  %v955_v17 = vadd.f32 0.05243302, %v954_v25  ;;  %v924_v49 = vadd.f32 0.014752088, %v923_v43  ;;  %v836_v11 = vmul.f32 %v835_v20, %v1829_v47  ;;  %v1929_v53 = vmul.f32 0.5, %v1817_v21 }
  0xdd   : > { %v1932_v16 = vmul.f32 0.5, %v1838_v0  ;;  %v1032_v19 = vmul.f32 %v1031_v38, %v1910_v13  ;;  %v798_v39 = vmul.f32 %v797_v61, %v1804_v37  ;;  %v916_v34 = vmul.f32 %v915_v5, %v1857_v54 }
  0xde   : > { %v925_v2 = vmul.f32 %v924_v49, %v1857_v54  ;;  %v962_v44 = vadd.f32 0.001143296, %v961_v41  ;;  %v956_v25 = vmul.f32 %v955_v17, %v1881_v8  ;;  %v994_v32 = vmul.f32 %v993_v26, %v1892_v1 }
  0xdf   : > { %v1033_v20 = vadd.f32 0.0036580483, %v1032_v19  ;;  %v761_v21 = vmul.f32 3.8918573e-05, %v1781_v48  ;;  %v759_v3 = vadd.f32 1.1283791, %v758_v22 }
  0xe0   : > { %v875_v57 = vadd.f32 0.05243302, %v874_v35  ;;  %v926_v0 = vadd.f32 0.112945676, %v925_v2  ;;  %v963_v43 = vmul.f32 %v962_v44, %v1881_v8  ;;  %v837_v38 = vadd.f32 0.18741608, %v836_v11 }
  0xe1   : > { %v1034_v61 = vmul.f32 %v1033_v20, %v1910_v13  ;;  %v762_v31 = vadd.f32 0.001143296, %v761_v21  ;;  %v801_v5 = vmul.f32 3.8918573e-05, %v1804_v37  ;;  %v799_v49 = vadd.f32 1.1283791, %v798_v39 }
  0xe2   : > { %v917_v41 = vadd.f32 0.18741608, %v916_v34  ;;  %v927_v17 = vmul.f32 %v926_v0, %v1857_v54  ;;  %v964_v24 = vadd.f32 0.014752088, %v963_v43  ;;  %v957_v26 = vadd.f32 0.18741608, %v956_v25 }
  0xe3   : > { %v995_v19 = vadd.f32 0.05243302, %v994_v32  ;;  %v763_v23 = vmul.f32 %v762_v31, %v1781_v48  ;;  %v802_v22 = vadd.f32 0.001143296, %v801_v5  ;;  %v876_v35 = vmul.f32 %v875_v57, %v1841_v6 }
  0xe4   : > { %v928_v2 = vadd.f32 0.4994258, %v927_v17  ;;  %v965_v11 = vmul.f32 %v964_v24, %v1881_v8  ;;  %v601_v44 = vmul.f32 3.8918573e-05, %v1723_v50  ;;  %v838_v20 = vmul.f32 %v837_v38, %v1829_v47 }
  0xe5   : > { %v1035_v21 = vadd.f32 0.05243302, %v1034_v61  ;;  %v764_v39 = vadd.f32 0.014752088, %v763_v23  ;;  %v803_v34 = vmul.f32 %v802_v22, %v1804_v37  ;;  %v918_v0 = vmul.f32 %v917_v41, %v1857_v54 }
  0xe6   : > { %v929_v25 = vmul.f32 %v928_v2, %v1857_v54  ;;  %v966_v32 = vadd.f32 0.112945676, %v965_v11  ;;  %v602_v31 = vadd.f32 0.001143296, %v601_v44  ;;  %v958_v43 = vmul.f32 %v957_v26, %v1881_v8 }
  0xe7   : > { %v996_v57 = vmul.f32 %v995_v19, %v1892_v1  ;;  %v765_v24 = vmul.f32 %v764_v39, %v1781_v48  ;;  %v804_v5 = vadd.f32 0.014752088, %v803_v34  ;;  %v641_v61 = vmul.f32 3.8918573e-05, %v1726_v52 }
  0xe8   : > { %v1956_v17 = vadd.f32 1.0, %v929_v25  ;;  %v967_v38 = vmul.f32 %v966_v32, %v1881_v8  ;;  %v603_v23 = vmul.f32 %v602_v31, %v1723_v50  ;;  %v1962_v41 = vmul.f32 %v759_v3, %v1765_v18 }
  0xe9   : > { %v1036_v54 = vmul.f32 %v1035_v21, %v1910_v13  ;;  %v766_v22 = vadd.f32 0.112945676, %v765_v24  ;;  %v805_v26 = vmul.f32 %v804_v5, %v1804_v37  ;;  %v1966_v19 = vadd.f32 1.1283791, %v838_v20 }
  0xea   : > { %v1968_v2 = vadd.f32 0.18741608, %v876_v35  ;;  %v919_v11 = vadd.f32 1.1283791, %v918_v0  ;;  %1434 = vrcp.f32 %v1956_v17  ;;  %v997_v44 = vadd.f32 0.18741608, %v996_v57 }
  0xeb   : > { %v968_v39 = vadd.f32 0.4994258, %v967_v38  ;;  %v767_v34 = vmul.f32 %v766_v22, %v1781_v48  ;;  %v806_v25 = vadd.f32 0.112945676, %v805_v26  ;;  %v1973_v18 = vmul.f32 %v799_v49, %v1784_v51 }
  0xec   : > { %v959_v3 = vadd.f32 1.1283791, %v958_v43  ;;  %v604_v21 = vadd.f32 0.014752088, %v603_v23  ;;  %v642_v32 = vadd.f32 0.001143296, %v641_v61  ;;  %vm936_vm4 = vweird.f32 %v1956_v17 }
  0xed   : > { %v1037_v31 = vadd.f32 0.18741608, %v1036_v54  ;;  %v969_v20 = vmul.f32 %v968_v39, %v1881_v8  ;;  %v768_v24 = vadd.f32 0.4994258, %v767_v34  ;;  %v807_v35 = vmul.f32 %v806_v25, %v1804_v37 }
  0xee   : > { %v940_v0 = vand.u32 2147483647, %v1956_v17  ;;  %v605_v57 = vmul.f32 %v604_v21, %v1723_v50  ;;  %v643_v5 = vmul.f32 %v642_v32, %v1726_v52  ;;  %v441_v38 = vmul.f32 3.8918573e-05, %v1693_v28 }
  0xef   : > { %v942_v51 = vand.u32 2147483648, %v1956_v17  ;;  %v1982_v49 = vadd.f32 1.0, %v969_v20  ;;  %v769_v43 = vmul.f32 %v768_v24, %v1781_v48  ;;  %v808_v23 = vadd.f32 0.4994258, %v807_v35 }
  0xf0   : > { %v1435_v61 = vpop.eup %1434  ;;  %v920_v8 = vmul.f32 %v919_v11, %v1834_v55  ;;  %v606_v54 = vadd.f32 0.112945676, %v605_v57  ;;  %v644_v22 = vadd.f32 0.014752088, %v643_v5  ;;  %v442_v26 = vadd.f32 0.001143296, %v441_v38 }
  0xf1   : > { %v1987_v39 = vmul.f32 %v959_v3, %v1860_v10  ;;  %v1990_v34 = vmul.f32 %v997_v44, %v1892_v1  ;;  %v932_v25 = vmul.f32 %v1435_v61, %v1956_v17  ;;  %1436 = vrcp.f32 %v1982_v49 }
  0xf2   : > { %v1995_v21 = vmul.f32 %v1037_v31, %v1910_v13  ;;  %vm1997_vm2 = vcmp.eq.f32.partialorder %v940_v0, 8.507059e+37  ;;  %v2001_v55 = vadd.f32 1.0, %v769_v43  ;;  %v809_v11 = vmul.f32 %v808_v23, %v1804_v37 }
  0xf3   : > { %v933_v10 = vsub.f32 1.0, %v932_v25  ;;  %v607_v3 = vmul.f32 %v606_v54, %v1723_v50  ;;  %v645_v44 = vmul.f32 %v644_v22, %v1726_v52  ;;  %v443_v32 = vmul.f32 %v442_v26, %v1693_v28 }
  0xf4   : > { %v943_v20 = vor.u32 1.1754944e-38, %v942_v51  ;;  %v980_v24 = vand.u32 2147483647, %v1982_v49  ;;  %v982_v31 = vand.u32 2147483648, %v1982_v49  ;;  %1438 = vrcp.f32 %v2001_v55 }
  0xf5   : > { %v934_v35 = vmul.f32 %v1435_v61, %v933_v10  ;;  %vm937_vm3 = vweird.f32 %v1435_v61  ;;  %v2010_v0 = vadd.f32 1.0, %v809_v11  ;;  %v481_v37 = vmul.f32 3.8918573e-05, %v1695_v29 }
  0xf6   : > { %v608_v57 = vadd.f32 0.4994258, %v607_v3  ;;  %v646_v5 = vadd.f32 0.112945676, %v645_v44  ;;  %v444_v38 = vadd.f32 0.014752088, %v443_v32  ;;  %vm938_vm5 = vmor %vm936_vm4, %vm937_vm3  ;;  %vm976_vm6 = vweird.f32 %v1982_v49 }
  0xf7   : > { %v1437_v43 = vpop.eup %1436  ;;  %v935_v23 = vadd.f32 %v1435_v61, %v934_v35  ;;  %v780_v51 = vand.u32 2147483647, %v2001_v55  ;;  %v782_v54 = vand.u32 2147483648, %v2001_v55  ;;  %1440 = vrcp.f32 %v2010_v0 }
  0xf8   : > { %v972_v22 = vmul.f32 %v1437_v43, %v1982_v49  ;;  %vm2019_vm7 = vcmp.eq.f32.partialorder %v980_v24, 8.507059e+37  ;;  %v983_v17 = vor.u32 1.1754944e-38, %v982_v31  ;;  %vm776_vm8 = vweird.f32 %v2001_v55 }
  0xf9   : > { %v939_v25 = vsel %vm938_vm5, %v1435_v61, %v935_v23  ;;  %v609_v11 = vmul.f32 %v608_v57, %v1723_v50  ;;  %v647_v10 = vmul.f32 %v646_v5, %v1726_v52  ;;  %v820_v35 = vand.u32 2147483647, %v2010_v0 }
  0xfa   : > { %v1439_v3 = vpop.eup %1438  ;;  %v944_v44 = vsel %vm1997_vm2, %v943_v20, %v939_v25  ;;  %v973_v32 = vsub.f32 1.0, %v972_v22  ;;  %v445_v24 = vmul.f32 %v444_v38, %v1693_v28  ;;  %vm977_vm9 = vweird.f32 %v1437_v43 }
  0xfb   : > { %v945_v42 = vmul.f32 %v944_v44, %v920_v8  ;;  %v772_v31 = vmul.f32 %v1439_v3, %v2001_v55  ;;  %vm2031_vm10 = vcmp.eq.f32.partialorder %v780_v51, 8.507059e+37  ;;  %v783_v50 = vor.u32 1.1754944e-38, %v782_v54  ;;  %vm978_vm14 = vmor %vm976_vm6, %vm977_vm9 }
  0xfc   : > { %v974_v57 = vmul.f32 %v1437_v43, %v973_v32  ;;  %vm816_vm11 = vweird.f32 %v2010_v0  ;;  %v2036_v5 = vadd.f32 1.0, %v609_v11  ;;  %v648_v48 = vadd.f32 0.4994258, %v647_v10 }
  0xfd   : > { %v1441_v20 = vpop.eup %1440  ;;  %v1354_v23 = vclamps-f32 %v945_v42, 1.0  ;;  %v773_v22 = vsub.f32 1.0, %v772_v31  ;;  %vm777_vm12 = vweird.f32 %v1439_v3  ;;  %v822_v8 = vand.u32 2147483648, %v2010_v0 }
  0xfe   : > { %v975_v38 = vadd.f32 %v1437_v43, %v974_v57  ;;  %v812_v25 = vmul.f32 %v1441_v20, %v2010_v0  ;;  %vm2040_vm13 = vcmp.eq.f32.partialorder %v820_v35, 8.507059e+37  ;;  %1442 = vrcp.f32 %v2036_v5  ;;  %vm778_vm0 = vmor %vm776_vm8, %vm777_vm12 }
  0xff   : > { %v446_v54 = vadd.f32 0.112945676, %v445_v24  ;;  %v1080_v44 = vadd.f32 1.0, %v1354_v23  ;;  %v774_v42 = vmul.f32 %v1439_v3, %v773_v22  ;;  %v482_v11 = vadd.f32 0.001143296, %v481_v37 }
 0x100   : > { %v841_v10 = vmul.f32 3.8918573e-05, %v1829_v47  ;;  %v979_v32 = vsel %vm978_vm14, %v1437_v43, %v975_v38  ;;  %v813_v31 = vsub.f32 1.0, %v812_v25  ;;  %vm817_vm15 = vweird.f32 %v1441_v20 }
 0x101   : > { %v649_v35 = vmul.f32 %v648_v48, %v1726_v52  ;;  %v1096_v57 = vmul.f32 %v1080_v44, %v1929_v53  ;;  %v984_v7 = vsel %vm2019_vm7, %v983_v17, %v979_v32  ;;  %v775_v24 = vadd.f32 %v1439_v3, %v774_v42  ;;  %vm818_vm2 = vmor %vm816_vm11, %vm817_vm15 }
 0x102   : > { %v620_v23 = vand.u32 2147483647, %v2036_v5  ;;  %v985_v49 = vmul.f32 %v984_v7, %v1987_v39  ;;  %v814_v37 = vmul.f32 %v1441_v20, %v813_v31  ;;  %v622_v43 = vand.u32 2147483648, %v2036_v5 }
 0x103   : > { %v2059_v22 = vadd.f32 1.0, %v649_v35  ;;  %1133 = vmatpush.msrb.mxu0 %v1096_v57  ;;  %v779_v52 = vsel %vm778_vm0, %v1439_v3, %v775_v24  ;;  %v823_v53 = vor.u32 1.1754944e-38, %v822_v8  ;;  %vm616_vm1 = vweird.f32 %v2036_v5 }
 0x104   : > { %v447_v26 = vmul.f32 %v446_v54, %v1693_v28  ;;  %v1443_v17 = vpop.eup %1442  ;;  %v1355_v48 = vclamps-f32 %v985_v49, 1.0  ;;  %v784_v7 = vsel %vm2031_vm10, %v783_v50, %v779_v52  ;;  %v815_v39 = vadd.f32 %v1441_v20, %v814_v37 }
 0x105   : > { %1444 = vrcp.f32 %v2059_v22  ;;  %v785_v55 = vmul.f32 %v784_v7, %v1962_v41  ;;  %v612_v3 = vmul.f32 %v1443_v17, %v2036_v5  ;;  %vm2071_vm3 = vcmp.eq.f32.partialorder %v620_v23, 8.507059e+37 }
 0x106   : > { %v483_v38 = vmul.f32 %v482_v11, %v1695_v29  ;;  %v1081_v25 = vadd.f32 1.0, %v1355_v48  ;;  %v819_v61 = vsel %vm818_vm2, %v1441_v20, %v815_v39  ;;  %v623_v50 = vor.u32 1.1754944e-38, %v622_v43 }
 0x107   : > { %v842_v54 = vadd.f32 0.001143296, %v841_v10  ;;  %v1350_v44 = vclamps-f32 %v785_v55, 1.0  ;;  %v824_v41 = vsel %vm2040_vm13, %v823_v53, %v819_v61  ;;  %v613_v42 = vsub.f32 1.0, %v612_v3 }
 0x108   : > { %v448_v32 = vadd.f32 0.4994258, %v447_v26  ;;  %v1097_v0 = vmul.f32 %v1081_v25, %v1932_v16  ;;  %v825_v31 = vmul.f32 %v824_v41, %v1973_v18  ;;  %vm617_vm4 = vweird.f32 %v1443_v17 }
 0x109   : > { %v660_v35 = vand.u32 2147483647, %v2059_v22  ;;  %v1076_v57 = vadd.f32 1.0, %v1350_v44  ;;  %v614_v24 = vmul.f32 %v1443_v17, %v613_v42  ;;  %v484_v20 = vadd.f32 0.014752088, %v483_v38  ;;  %vm618_vm5 = vmor %vm616_vm1, %vm617_vm4 }
 0x10a   : > { %v449_v11 = vmul.f32 %v448_v32, %v1693_v28  ;;  %1156 = vmatpush.msrb.mxu1 %v1097_v0  ;;  %v1351_v10 = vclamps-f32 %v825_v31, 1.0  ;;  %v1001_v51 = vmul.f32 3.8918573e-05, %v1892_v1  ;;  %v1041_v49 = vmul.f32 3.8918573e-05, %v1910_v13 }
 0x10b   : > { %v1445_v23 = vpop.eup %1444  ;;  %v843_v37 = vmul.f32 %v842_v54, %v1829_v47  ;;  %v1092_v16 = vmul.f32 %v1076_v57, %v1879_v60  ;;  %v615_v18 = vadd.f32 %v1443_v17, %v614_v24  ;;  %v662_v52 = vand.u32 2147483648, %v2059_v22 }
 0x10c   : > { %v652_v43 = vmul.f32 %v1445_v23, %v2059_v22  ;;  %v1077_v53 = vadd.f32 1.0, %v1351_v10  ;;  %v2091_v28 = vadd.f32 1.0, %v449_v11  ;;  %v485_v26 = vmul.f32 %v484_v20, %v1695_v29 }
 0x10d   : > { %v1002_v48 = vadd.f32 0.001143296, %v1001_v51  ;;  %1134 = vmatpush.msrb.mxu0 %v1092_v16  ;;  %v619_v7 = vsel %vm618_vm5, %v1443_v17, %v615_v18  ;;  %v1042_v55 = vadd.f32 0.001143296, %v1041_v49  ;;  %v844_v60 = vadd.f32 0.014752088, %v843_v37 }
 0x10e   : > { %v653_v39 = vsub.f32 1.0, %v652_v43  ;;  %v1093_v3 = vmul.f32 %v1077_v53, %v1884_v9  ;;  %v624_v38 = vsel %vm2071_vm3, %v623_v50, %v619_v7  ;;  %vm656_vm6 = vweird.f32 %v2059_v22 }
 0x10f   : > { %1446 = vrcp.f32 %v2091_v28  ;;  %v625_v5 = vmul.f32 %v624_v38, %v1898_v45  ;;  %vm657_vm7 = vweird.f32 %v1445_v23  ;;  %vm2100_vm8 = vcmp.eq.f32.partialorder %v660_v35, 8.507059e+37 }
 0x110   : > { %v654_v25 = vmul.f32 %v1445_v23, %v653_v39  ;;  %1157 = vmatpush.msrb.mxu1 %v1093_v3  ;;  %v486_v17 = vadd.f32 0.112945676, %v485_v26  ;;  %v1003_v54 = vmul.f32 %v1002_v48, %v1892_v1  ;;  %v1043_v9 = vmul.f32 %v1042_v55, %v1910_v13  ;;  %vm658_vm9 = vmor %vm656_vm6, %vm657_vm7 }
 0x111   : > { %v845_v8 = vmul.f32 %v844_v60, %v1829_v47  ;;  %v1346_v50 = vclamps-f32 %v625_v5, 1.0  ;;  %v663_v41 = vor.u32 1.1754944e-38, %v662_v52  ;;  %v460_v42 = vand.u32 2147483647, %v2091_v28 }
 0x112   : > { %v655_v44 = vadd.f32 %v1445_v23, %v654_v25  ;;  %v487_v45 = vmul.f32 %v486_v17, %v1695_v29  ;;  %v1004_v32 = vadd.f32 0.014752088, %v1003_v54  ;;  %v1044_v0 = vadd.f32 0.014752088, %v1043_v9 }
 0x113   : > { %v846_v31 = vadd.f32 0.112945676, %v845_v8  ;;  %v1072_v35 = vadd.f32 1.0, %v1346_v50  ;;  %v881_v24 = vmul.f32 3.8918573e-05, %v1841_v6  ;;  %vm456_vm11 = vweird.f32 %v2091_v28 }
 0x114   : > { %v659_v57 = vsel %vm658_vm9, %v1445_v23, %v655_v44  ;;  %v681_v11 = vmul.f32 3.8918573e-05, %v1753_v12  ;;  %v488_v51 = vadd.f32 0.4994258, %v487_v45  ;;  %v1005_v49 = vmul.f32 %v1004_v32, %v1892_v1 }
 0x115   : > { %v1447_v20 = vpop.eup %1446  ;;  %v664_v10 = vsel %vm2100_vm8, %v663_v41, %v659_v57  ;;  %v1045_v22 = vmul.f32 %v1044_v0, %v1910_v13  ;;  %v1088_v37 = vmul.f32 %v1072_v35, %v1790_v59  ;;  %v462_v23 = vand.u32 2147483648, %v2091_v28 }
 0x116   : > { %v665_v16 = vmul.f32 %v664_v10, %v1913_v58  ;;  %v452_v18 = vmul.f32 %v1447_v20, %v2091_v28  ;;  %v489_v43 = vmul.f32 %v488_v51, %v1695_v29  ;;  %v1006_v52 = vadd.f32 0.112945676, %v1005_v49 }
 0x117   : > { %v1046_v53 = vadd.f32 0.112945676, %v1045_v22  ;;  %v847_v26 = vmul.f32 %v846_v31, %v1829_v47  ;;  %1135 = vmatpush.msrb.mxu0 %v1088_v37  ;;  %v882_v39 = vadd.f32 0.001143296, %v881_v24  ;;  %v682_v55 = vadd.f32 0.001143296, %v681_v11 }
 0x118   : > { %v1347_v48 = vclamps-f32 %v665_v16, 1.0  ;;  %v453_v7 = vsub.f32 1.0, %v452_v18  ;;  %v2123_v60 = vadd.f32 1.0, %v489_v43  ;;  %v1007_v59 = vmul.f32 %v1006_v52, %v1892_v1 }
 0x119   : > { %v1047_v58 = vmul.f32 %v1046_v53, %v1910_v13  ;;  %v848_v3 = vadd.f32 0.4994258, %v847_v26  ;;  %vm457_vm10 = vweird.f32 %v1447_v20  ;;  %v883_v29 = vmul.f32 %v882_v39, %v1841_v6 }
 0x11a   : > { %v1073_v38 = vadd.f32 1.0, %v1347_v48  ;;  %v454_v5 = vmul.f32 %v1447_v20, %v453_v7  ;;  %v999_v25 = vadd.f32 1.1283791, %v1990_v34  ;;  %1448 = vrcp.f32 %v2123_v60  ;;  %vm458_vm12 = vmor %vm456_vm11, %vm457_vm10 }
 0x11b   : > { %v683_v61 = vmul.f32 %v682_v55, %v1753_v12  ;;  %v1008_v9 = vadd.f32 0.4994258, %v1007_v59  ;;  %v1048_v8 = vadd.f32 0.4994258, %v1047_v58  ;;  %v1039_v50 = vadd.f32 1.1283791, %v1995_v21 }
 0x11c   : > { %v1089_v17 = vmul.f32 %v1073_v38, %v1793_v63  ;;  %v455_v54 = vadd.f32 %v1447_v20, %v454_v5  ;;  %vm461_vm13 = vcmp.eq.f32.partialorder %v460_v42, 8.507059e+37  ;;  %v463_v44 = vor.u32 1.1754944e-38, %v462_v23  ;;  %v2432_v58 = vld [vmem:[#allocation17_spill] sm:$0xff] }
 0x11d   : > { %v849_v41 = vmul.f32 %v848_v3, %v1829_v47  ;;  %v1009_v28 = vmul.f32 %v1008_v9, %v1892_v1  ;;  %v1049_v45 = vmul.f32 %v1048_v8, %v1910_v13  ;;  %v884_v32 = vadd.f32 0.014752088, %v883_v29 }
 0x11e   : > { %1158 = vmatpush.msrb.mxu1 %v1089_v17  ;;  %v459_v34 = vsel %vm458_vm12, %v1447_v20, %v455_v54  ;;  %v2139_v63 = vmul.f32 %v1966_v19, %v1809_v14  ;;  %v684_v21 = vadd.f32 0.014752088, %v683_v61  ;;  %v2144_v42 = vmul.f32 %v999_v25, %v1873_v36 }
 0x11f   : > { %v464_v0 = vsel %vm461_vm13, %v463_v44, %v459_v34  ;;  %v2141_v31 = vadd.f32 1.0, %v849_v41  ;;  %v2147_v35 = vadd.f32 1.0, %v1009_v28  ;;  %v2149_v57 = vadd.f32 1.0, %v1049_v45 }
 0x120   : > { %v465_v47 = vmul.f32 %v464_v0, %v1854_v33  ;;  %v1449_v1 = vpop.eup %1448  ;;  %v2152_v13 = vmul.f32 %v1039_v50, %v1895_v30  ;;  %v500_v14 = vand.u32 2147483647, %v2123_v60  ;;  %v502_v19 = vand.u32 2147483648, %v2123_v60 }
 0x121   : > { %1450 = vrcp.f32 %v2141_v31  ;;  %v492_v36 = vmul.f32 %v1449_v1, %v2123_v60  ;;  %v885_v33 = vmul.f32 %v884_v32, %v1841_v6  ;;  %v1022_v11 = vand.u32 2147483648, %v2147_v35 }
 0x122   : > { %v1342_v24 = vclamps-f32 %v465_v47, 1.0  ;;  %1452 = vrcp.f32 %v2147_v35  ;;  %v685_v30 = vmul.f32 %v684_v21, %v1753_v12  ;;  %v721_v20 = vmul.f32 3.8918573e-05, %v1798_v4 }
 0x123   : > { %1454 = vrcp.f32 %v2149_v57  ;;  %v493_v51 = vsub.f32 1.0, %v492_v36  ;;  %v860_v49 = vand.u32 2147483647, %v2141_v31  ;;  %v862_v22 = vand.u32 2147483648, %v2141_v31 }
 0x124   : > { %v1068_v10 = vadd.f32 1.0, %v1342_v24  ;;  %vm496_vm14 = vweird.f32 %v2123_v60  ;;  %vm2167_vm15 = vcmp.eq.f32.partialorder %v500_v14, 8.507059e+37  ;;  %v503_v16 = vor.u32 1.1754944e-38, %v502_v19 }
 0x125   : > { %v1020_v18 = vand.u32 2147483647, %v2147_v35  ;;  %v494_v43 = vmul.f32 %v1449_v1, %v493_v51  ;;  %vm497_vm0 = vweird.f32 %v1449_v1  ;;  %v1060_v52 = vand.u32 2147483647, %v2149_v57 }
 0x126   : > { %v1084_v23 = vmul.f32 %v1068_v10, %v1779_v46  ;;  %vm856_vm1 = vweird.f32 %v2141_v31  ;;  %vm1016_vm2 = vweird.f32 %v2147_v35  ;;  %v1023_v26 = vor.u32 1.1754944e-38, %v1022_v11  ;;  %vm498_vm5 = vmor %vm496_vm14, %vm497_vm0 }
 0x127   : > { %v1451_v53 = vpop.eup %1450  ;;  %v1062_v48 = vand.u32 2147483648, %v2149_v57  ;;  %v886_v7 = vadd.f32 0.112945676, %v885_v33  ;;  %v686_v39 = vadd.f32 0.112945676, %v685_v30  ;;  %v495_v59 = vadd.f32 %v1449_v1, %v494_v43 }
 0x128   : > { %v1453_v55 = vpop.eup %1452  ;;  %1136 = vmatpush.msrb.mxu0 %v1084_v23  ;;  %vm1056_vm3 = vweird.f32 %v2149_v57  ;;  %v852_v46 = vmul.f32 %v1451_v53, %v2141_v31  ;;  %vm2179_vm4 = vcmp.eq.f32.partialorder %v860_v49, 8.507059e+37  ;;  %v863_v3 = vor.u32 1.1754944e-38, %v862_v22 }
 0x129   : > { %v722_v38 = vadd.f32 0.001143296, %v721_v20  ;;  %v1455_v5 = vpop.eup %1454  ;;  %v1012_v29 = vmul.f32 %v1453_v55, %v2147_v35  ;;  %vm2187_vm6 = vcmp.eq.f32.partialorder %v1020_v18, 8.507059e+37  ;;  %vm857_vm7 = vweird.f32 %v1451_v53 }
 0x12a   : > { %v887_v61 = vmul.f32 %v886_v7, %v1841_v6  ;;  %v687_v17 = vmul.f32 %v686_v39, %v1753_v12  ;;  %v499_v54 = vsel %vm498_vm5, %v1449_v1, %v495_v59  ;;  %vm1017_vm8 = vweird.f32 %v1453_v55  ;;  %vm858_vm11 = vmor %vm856_vm1, %vm857_vm7  ;;  %v2430_v7 = vld [vmem:[#allocation13_spill] sm:$0xff]  ;;  %v2431_v59 = vld [vmem:[#allocation19_spill] sm:$0xff] }
 0x12b   : > { %v1052_v9 = vmul.f32 %v1455_v5, %v2149_v57  ;;  %vm2194_vm9 = vcmp.eq.f32.partialorder %v1060_v52, 8.507059e+37  ;;  %v853_v60 = vsub.f32 1.0, %v852_v46  ;;  %v504_v50 = vsel %vm2167_vm15, %v503_v16, %v499_v54  ;;  %vm1018_vm12 = vmor %vm1016_vm2, %vm1017_vm8 }
 0x12c   : > { %v1013_v44 = vsub.f32 1.0, %v1012_v29  ;;  %v888_v41 = vadd.f32 0.4994258, %v887_v61  ;;  %v688_v34 = vadd.f32 0.4994258, %v687_v17  ;;  %v505_v28 = vmul.f32 %v504_v50, %v1863_v40  ;;  %v2433_v17 = vld [vmem:[#allocation18_spill] sm:$0xff] }
 0x12d   : > { %v1053_v45 = vsub.f32 1.0, %v1052_v9  ;;  %v854_v32 = vmul.f32 %v1451_v53, %v853_v60  ;;  %v723_v0 = vmul.f32 %v722_v38, %v1798_v4  ;;  %vm1057_vm10 = vweird.f32 %v1455_v5 }
 0x12e   : > { %v1014_v21 = vmul.f32 %v1453_v55, %v1013_v44  ;;  %v889_v47 = vmul.f32 %v888_v41, %v1841_v6  ;;  %v689_v1 = vmul.f32 %v688_v34, %v1753_v12  ;;  %v1343_v14 = vclamps-f32 %v505_v28, 1.0  ;;  %vm1058_vm13 = vmor %vm1056_vm3, %vm1057_vm10 }
 0x12f   : > { %v1054_v19 = vmul.f32 %v1455_v5, %v1053_v45  ;;  %v855_v24 = vadd.f32 %v1451_v53, %v854_v32  ;;  %v724_v36 = vadd.f32 0.014752088, %v723_v0  ;;  %v1063_v11 = vor.u32 1.1754944e-38, %v1062_v48 }
 0x130   : > { %v1015_v33 = vadd.f32 %v1453_v55, %v1014_v21  ;;  %v2207_v40 = vadd.f32 1.0, %v889_v47  ;;  %v521_v30 = vmul.f32 3.8918573e-05, %v1740_v62  ;;  %v1069_v20 = vadd.f32 1.0, %v1343_v14 }
 0x131   : > { %v1055_v12 = vadd.f32 %v1455_v5, %v1054_v19  ;;  %v859_v10 = vsel %vm858_vm11, %v1451_v53, %v855_v24  ;;  %v2213_v51 = vadd.f32 1.0, %v689_v1  ;;  %v725_v22 = vmul.f32 %v724_v36, %v1798_v4 }
 0x132   : > { %v1019_v49 = vsel %vm1018_vm12, %v1453_v55, %v1015_v33  ;;  %v864_v31 = vsel %vm2179_vm4, %v863_v3, %v859_v10  ;;  %1456 = vrcp.f32 %v2207_v40  ;;  %v1085_v37 = vmul.f32 %v1069_v20, %v1787_v56 }
 0x133   : > { %v1024_v35 = vsel %vm2187_vm6, %v1023_v26, %v1019_v49  ;;  %v1059_v16 = vsel %vm1058_vm13, %v1455_v5, %v1055_v12  ;;  %v865_v18 = vmul.f32 %v864_v31, %v2139_v63  ;;  %v2227_v23 = vadd.f32 0.05243302, %v1820_v27  ;;  %v2428_v63 = vld [vmem:[#allocation16_spill] sm:$0xff] }
 0x134   : > { %v1025_v57 = vmul.f32 %v1024_v35, %v2144_v42  ;;  %v1064_v43 = vsel %vm2194_vm9, %v1063_v11, %v1059_v16  ;;  %v522_v52 = vadd.f32 0.001143296, %v521_v30  ;;  %v878_v53 = vmul.f32 %v1968_v2, %v1841_v6  ;;  %1159 = vmatpush.msrb.mxu1 %v1085_v37  ;;  %v2429_v27 = vld [vmem:[#allocation20_spill] sm:$0xff]  ;;  %v2434_v35 = vld [vmem:[#allocation15_spill] sm:$0xff] }
 0x135   : > { %v1065_v56 = vmul.f32 %v1064_v43, %v2152_v13  ;;  %v1352_v48 = vclamps-f32 %v865_v18, 1.0  ;;  %1458 = vrcp.f32 %v2213_v51  ;;  %v2238_v26 = vmul.f32 %v2428_v63, %v1757_v15  ;;  %v2435_v63 = vld [vmem:[#allocation10_spill] sm:$0xff] }
 0x136   : > { %v716_v42 = vmul.f32 %v2429_v27, %v1798_v4  ;;  %v406_v39 = vmul.f32 0.5, %v2430_v7  ;;  %v1356_v55 = vclamps-f32 %v1025_v57, 1.0  ;;  %v679_v46 = vadd.f32 1.1283791, %v2431_v59 }
 0x137   : > { %v410_v6 = vmul.f32 0.5, %v2432_v58  ;;  %v1357_v2 = vclamps-f32 %v1065_v56, 1.0  ;;  %v726_v3 = vadd.f32 0.112945676, %v725_v22  ;;  %v1078_v5 = vadd.f32 1.0, %v1352_v48 }
 0x138   : > { %v1457_v13 = vpop.eup %1456  ;;  %v1082_v38 = vadd.f32 1.0, %v1356_v55  ;;  %v523_v29 = vmul.f32 %v522_v52, %v1740_v62  ;;  %v561_v25 = vmul.f32 3.8918573e-05, %v1757_v15  ;;  %v879_v61 = vadd.f32 1.1283791, %v878_v53 }
 0x139   : > { %v411_v54 = vmul.f32 0.5, %v2433_v17  ;;  %v1083_v9 = vadd.f32 1.0, %v1357_v2  ;;  %v892_v8 = vmul.f32 %v1457_v13, %v2207_v40  ;;  %v902_v50 = vand.u32 2147483648, %v2207_v40 }
 0x13a   : > { %v1098_v60 = vmul.f32 %v1082_v38, %v410_v6  ;;  %v727_v44 = vmul.f32 %v726_v3, %v1798_v4  ;;  %v524_v41 = vadd.f32 0.014752088, %v523_v29  ;;  %vm896_vm14 = vweird.f32 %v2207_v40 }
 0x13b   : > { %v1459_v34 = vpop.eup %1458  ;;  %v1099_v28 = vmul.f32 %v1083_v9, %v411_v54  ;;  %v893_v45 = vsub.f32 1.0, %v892_v8  ;;  %v562_v32 = vadd.f32 0.001143296, %v561_v25  ;;  %v1094_v0 = vmul.f32 %v1078_v5, %v406_v39 }
 0x13c   : > { %1179 = vmatpush.msrb.mxu2 %v1098_v60  ;;  %v692_v21 = vmul.f32 %v1459_v34, %v2213_v51  ;;  %v728_v47 = vadd.f32 0.4994258, %v727_v44  ;;  %v525_v1 = vmul.f32 %v524_v41, %v1740_v62  ;;  %vm897_vm15 = vweird.f32 %v1457_v13 }
 0x13d   : > { %1202 = vmatpush.msrb.mxu3 %v1099_v28  ;;  %v894_v14 = vmul.f32 %v1457_v13, %v893_v45  ;;  %v900_v19 = vand.u32 2147483647, %v2207_v40  ;;  %v563_v24 = vmul.f32 %v562_v32, %v1757_v15  ;;  %v903_v36 = vor.u32 1.1754944e-38, %v902_v50  ;;  %vm898_vm0 = vmor %vm896_vm14, %vm897_vm15 }
 0x13e   : > { %1180 = vmatpush.msrb.mxu2 %v1094_v0  ;;  %v693_v33 = vsub.f32 1.0, %v692_v21  ;;  %v729_v11 = vmul.f32 %v728_v47, %v1798_v4  ;;  %v526_v30 = vadd.f32 0.112945676, %v525_v1  ;;  %v700_v12 = vand.u32 2147483647, %v2213_v51  ;;  %v2297_v21 = vld [vmem:[%s2374_s3 + $0x8] sm:$0xff] }
 0x13f   : > { %v895_v20 = vadd.f32 %v1457_v13, %v894_v14  ;;  %v702_v10 = vand.u32 2147483648, %v2213_v51  ;;  %v564_v49 = vadd.f32 0.014752088, %v563_v24  ;;  %vm697_vm1 = vweird.f32 %v1459_v34 }
 0x140   : > { %v694_v31 = vmul.f32 %v1459_v34, %v693_v33  ;;  %v2261_v22 = vadd.f32 1.0, %v729_v11  ;;  %v527_v37 = vmul.f32 %v526_v30, %v1740_v62  ;;  %v880_v16 = vmul.f32 %v879_v61, %v2434_v35 }
 0x141   : > { %v899_v18 = vsel %vm898_vm0, %v1457_v13, %v895_v20  ;;  %vm901_vm2 = vcmp.eq.f32.partialorder %v900_v19, 8.507059e+37  ;;  %v565_v57 = vmul.f32 %v564_v49, %v1757_v15  ;;  %vm696_vm3 = vweird.f32 %v2213_v51  ;;  %v2436_v13 = vld [vmem:[#allocation14_spill] sm:$0xff]  ;;  %v1102_v20 = vld [vmem:[%s2375_s4] sm:$0xff] }
 0x142   : > { %v904_v43 = vsel %vm901_vm2, %v903_v36, %v899_v18  ;;  %v695_v52 = vadd.f32 %v1459_v34, %v694_v31  ;;  %1460 = vrcp.f32 %v2261_v22  ;;  %v717_v40 = vadd.f32 0.18741608, %v716_v42  ;;  %vm698_vm4 = vmor %vm696_vm3, %vm697_vm1  ;;  %v2438_v36 = vld [vmem:[#allocation12_spill] sm:$0xff]  ;;  %1106 = vperm.xlu2 %1433, %v1102_v20  }
 0x143   : > { %v905_v53 = vmul.f32 %v904_v43, %v880_v16  ;;  %v703_v56 = vor.u32 1.1754944e-38, %v702_v10  ;;  %v528_v48 = vadd.f32 0.4994258, %v527_v37  ;;  %v680_v27 = vmul.f32 %v679_v46, %v2435_v63  ;;  %v2439_v43 = vld [vmem:[#allocation11_spill] sm:$0xff] }
 0x144   : > { %v699_v7 = vsel %vm698_vm4, %v1459_v34, %v695_v52  ;;  %vm701_vm5 = vcmp.eq.f32.partialorder %v700_v12, 8.507059e+37  ;;  %v566_v39 = vadd.f32 0.112945676, %v565_v57  ;;  %v516_v58 = vmul.f32 %v2227_v23, %v1740_v62  ;;  %v2281_v23 = vld [vmem:[%s2374_s3] sm:$0xff] }
 0x145   : > { %v1353_v55 = vclamps-f32 %v905_v53, 1.0  ;;  %v704_v59 = vsel %vm701_vm5, %v703_v56, %v699_v7  ;;  %v529_v51 = vmul.f32 %v528_v48, %v1740_v62  ;;  %v555_v42 = vadd.f32 0.05243302, %v2238_v26  ;;  %v1103_v56 = vld [vmem:[%s2375_s4 + $0x8] sm:$0xff] }
 0x146   : > { %v705_v6 = vmul.f32 %v704_v59, %v680_v27  ;;  %v567_v2 = vmul.f32 %v566_v39, %v1757_v15  ;;  %v718_v3 = vmul.f32 %v717_v40, %v1798_v4  ;;  %v407_v38 = vmul.f32 0.5, %v2436_v13  ;;  %v2437_v4 = vld [vmem:[#allocation8_spill] sm:$0xff] }
 0x147   : > { %v1079_v46 = vadd.f32 1.0, %v1353_v55  ;;  %v2276_v25 = vadd.f32 1.0, %v529_v51  ;;  %vm1114_vm6 = vcmask 261120   ;;  %v402_v26 = vmul.f32 0.5, %v2437_v4 }
 0x148   : > { %v1461_v5 = vpop.eup %1460  ;;  %v1348_v29 = vclamps-f32 %v705_v6, 1.0  ;;  %v568_v61 = vadd.f32 0.4994258, %v567_v2  ;;  %1358 = vmatmul.msk.f32.vlgmr.msrb.gmra.mxu0 %vm1114_vm6, %v2281_v23  ;;  %1360 = vmatmul.msk.f32.vlgmr.msrb.gmra.mxu1 %vm1114_vm6, %v2281_v23  ;;  %v517_v8 = vadd.f32 0.18741608, %v516_v58  ;;  %v556_v44 = vmul.f32 %v555_v42, %v1757_v15 }
 0x149   : > { %v1095_v17 = vmul.f32 %v1079_v46, %v407_v38  ;;  %v732_v54 = vmul.f32 %v1461_v5, %v2261_v22  ;;  %1462 = vrcp.f32 %v2276_v25  ;;  %v719_v41 = vadd.f32 1.1283791, %v718_v3  ;;  %v2441_v38 = vld [vmem:[#allocation9_spill] sm:$0xff] }
 0x14a   : > { %v1074_v9 = vadd.f32 1.0, %v1348_v29  ;;  %v569_v50 = vmul.f32 %v568_v61, %v1757_v15  ;;  %v742_v28 = vand.u32 2147483648, %v2261_v22  ;;  %vm737_vm7 = vweird.f32 %v1461_v5  ;;  %1111 = vperm.xlu2 %1433, %v1103_v56   ;;  %v2442_v29 = vld [vmem:[#allocation5_spill] sm:$0xff] }
 0x14b   : > { %1203 = vmatpush.msrb.mxu3 %v1095_v17  ;;  %v733_v60 = vsub.f32 1.0, %v732_v54  ;;  %v740_v32 = vand.u32 2147483647, %v2261_v22  ;;  %vm736_vm8 = vweird.f32 %v2261_v22  ;;  %v518_v14 = vmul.f32 %v517_v8, %v1740_v62 }
 0x14c   : > { %v1090_v34 = vmul.f32 %v1074_v9, %v402_v26  ;;  %v570_v0 = vadd.f32 1.0, %v569_v50  ;;  %v557_v19 = vadd.f32 0.18741608, %v556_v44  ;;  %vm738_vm9 = vmor %vm736_vm8, %vm737_vm7  ;;  %v743_v24 = vor.u32 1.1754944e-38, %v742_v28  ;;  %v2443_v9 = vld [vmem:[#allocation7_spill] sm:$0xff] }
 0x14d   : > { %v734_v45 = vmul.f32 %v1461_v5, %v733_v60  ;;  %v720_v33 = vmul.f32 %v719_v41, %v2438_v36  ;;  %vm741_vm10 = vcmp.eq.f32.partialorder %v740_v32, 8.507059e+37  ;;  %v519_v49 = vadd.f32 1.1283791, %v518_v14 }
 0x14e   : > { %1181 = vmatpush.msrb.mxu2 %v1090_v34  ;;  %1464 = vrcp.f32 %v570_v0  ;;  %v558_v31 = vmul.f32 %v557_v19, %v1757_v15  ;;  %v542_v22 = vand.u32 2147483648, %v2276_v25  ;;  %v540_v18 = vand.u32 2147483647, %v2276_v25  ;;  %v2440_v15 = vld [vmem:[#allocation6_spill] sm:$0xff] }
 0x14f   : > { %v735_v47 = vadd.f32 %v1461_v5, %v734_v45  ;;  %v1463_v1 = vpop.eup %1462  ;;  %v403_v52 = vmul.f32 0.5, %v2439_v43  ;;  %vm536_vm12 = vweird.f32 %v2276_v25  ;;  %v520_v48 = vmul.f32 %v519_v49, %v2440_v15 }
 0x150   : > { %v532_v30 = vmul.f32 %v1463_v1, %v2276_v25  ;;  %1359 = vmatmul.msk.f32.gmra.mxu0 %vm1114_vm6, %v2297_v21  ;;  %1361 = vmatmul.msk.f32.gmra.mxu1 %vm1114_vm6, %v2297_v21  ;;  %vm537_vm11 = vweird.f32 %v1463_v1  ;;  %v559_v63 = vadd.f32 1.1283791, %v558_v31  ;;  %v543_v27 = vor.u32 1.1754944e-38, %v542_v22 }
 0x151   : > { %v739_v11 = vsel %vm738_vm9, %v1461_v5, %v735_v47  ;;  %vm538_vm13 = vmor %vm536_vm12, %vm537_vm11  ;;  %vm541_vm14 = vcmp.eq.f32.partialorder %v540_v18, 8.507059e+37  ;;  %v582_v59 = vand.u32 2147483648, %v570_v0  ;;  %v580_v51 = vand.u32 2147483647, %v570_v0 }
 0x152   : > { %v744_v62 = vsel %vm741_vm10, %v743_v24, %v739_v11  ;;  %v533_v10 = vsub.f32 1.0, %v532_v30  ;;  %vm576_vm0 = vweird.f32 %v570_v0  ;;  %v560_v46 = vmul.f32 %v559_v63, %v2441_v38 }
 0x153   : > { %v745_v12 = vmul.f32 %v744_v62, %v720_v33  ;;  %v583_v13 = vor.u32 1.1754944e-38, %v582_v59  ;;  %vm581_vm2 = vcmp.eq.f32.partialorder %v580_v51, 8.507059e+37  ;;  %v398_v25 = vmul.f32 0.5, %v2442_v29 }
 0x154   : > { %v1465_v37 = vpop.eup %1464  ;;  %v534_v16 = vmul.f32 %v1463_v1, %v533_v10  ;;  %v399_v8 = vmul.f32 0.5, %v2443_v9 }
 0x155   : > { %v1349_v35 = vclamps-f32 %v745_v12, 1.0  ;;  %v572_v57 = vmul.f32 %v1465_v37, %v570_v0  ;;  %vm577_vm15 = vweird.f32 %v1465_v37 }
 0x156   : > { %v535_v53 = vadd.f32 %v1463_v1, %v534_v16  ;;  %vm578_vm1 = vmor %vm576_vm0, %vm577_vm15 }
 0x157   : > { %v1075_v40 = vadd.f32 1.0, %v1349_v35  ;;  %v573_v7 = vsub.f32 1.0, %v572_v57 }
 0x158   : > { %v539_v55 = vsel %vm538_vm13, %v1463_v1, %v535_v53 }
 0x159   : > { %v1091_v39 = vmul.f32 %v1075_v40, %v403_v52  ;;  %v544_v58 = vsel %vm541_vm14, %v543_v27, %v539_v55  ;;  %v574_v6 = vmul.f32 %v1465_v37, %v573_v7 }
 0x15a   : > { %v545_v2 = vmul.f32 %v544_v58, %v520_v48 }
 0x15b   : > { %1204 = vmatpush.msrb.mxu3 %v1091_v39  ;;  %v575_v42 = vadd.f32 %v1465_v37, %v574_v6 }
 0x15c   : > { %v1344_v3 = vclamps-f32 %v545_v2, 1.0 }
 0x15d   : > { %v579_v5 = vsel %vm578_vm1, %v1465_v37, %v575_v42 }
 0x15e   : > { %v1070_v61 = vadd.f32 1.0, %v1344_v3  ;;  %v584_v17 = vsel %vm581_vm2, %v583_v13, %v579_v5 }
 0x15f   : > { %v585_v54 = vmul.f32 %v584_v17, %v560_v46 }
 0x160   : > { %v1086_v4 = vmul.f32 %v1070_v61, %v398_v25 }
 0x161   : > { %v1345_v26 = vclamps-f32 %v585_v54, 1.0 }
 0x162   : > { %1182 = vmatpush.msrb.mxu2 %v1086_v4 }
 0x163   : > { %v1071_v60 = vadd.f32 1.0, %v1345_v26  ;;  %1362 = vmatmul.msk.f32.vlgmr.msrb.gmra.mxu2 %vm1114_vm6, %v2281_v23 }
 0x165   : > { %v1087_v50 = vmul.f32 %v1071_v60, %v399_v8 }
 0x167   : > { %1205 = vmatpush.msrb.mxu3 %v1087_v50 }
 0x168   : > { %1364 = vmatmul.msk.f32.vlgmr.msrb.gmra.mxu3 %vm1114_vm6, %v2281_v23 }
 0x16b   : > { %1363 = vmatmul.msk.f32.gmra.mxu2 %vm1114_vm6, %v2297_v21 }
 0x170   : > { %1365 = vmatmul.msk.f32.gmra.mxu3 %vm1114_vm6, %v2297_v21 }
 0x19c   : > { %v1107_v44 = vpop.permute.xlu2 %1106 }
 0x1a4   : > { %v1112_v32 = vpop.permute.xlu2 %1111 }
 0x1c5   : > { %v1138_v41 = vpop.f32.mrf.mxu0  ;;  %v1161_v34 = vpop.f32.mrf.mxu1 }
 0x1c6   : > { %v1139_v28 = vadd.f32 %v1138_v41, %v1107_v44  ;;  %v1162_v45 = vadd.f32 %v1161_v34, %v1107_v44 }
 0x1c8   : > { %1213 = vst [vmem:[%s242_s8] sm:$0xff] %v1139_v28 }
 0x1c9   : > { %1214 = vst [vmem:[%s242_s8 + $0x8] sm:$0xff] %v1162_v45 }
 0x1cd   : > { %v1141_v23 = vpop.f32.mrf.mxu0  ;;  %v1164_v47 = vpop.f32.mrf.mxu1 }
 0x1ce   : > { %v1142_v0 = vadd.f32 %v1141_v23, %v1112_v32  ;;  %v1165_v1 = vadd.f32 %v1164_v47, %v1112_v32 }
 0x1d0   : > { %1217 = vst [vmem:[%s242_s8 + $0x20] sm:$0xff] %v1142_v0 }
 0x1d1   : > { %1218 = vst [vmem:[%s242_s8 + $0x28] sm:$0xff] %v1165_v1 }
 0x1e6   : > { %v1184_v21 = vpop.f32.mrf.mxu2 }
 0x1e7   : > { %v1185_v14 = vadd.f32 %v1184_v21, %v1107_v44 }
 0x1e9   : > { %1215 = vst [vmem:[%s242_s8 + $0x10] sm:$0xff] %v1185_v14 }
 0x1eb   : > { %v1207_v19 = vpop.f32.mrf.mxu3 }
 0x1ec   : > { %v1208_v24 = vadd.f32 %v1207_v19, %v1107_v44 }
 0x1ee   : > { %1216 = vst [vmem:[%s242_s8 + $0x18] sm:$0xff] %v1208_v24  ;;  %v1187_v36 = vpop.f32.mrf.mxu2 }
 0x1ef   : > { %v1188_v33 = vadd.f32 %v1187_v36, %v1112_v32 }
 0x1f1   : > { %1219 = vst [vmem:[%s242_s8 + $0x30] sm:$0xff] %v1188_v33 }
 0x1f3   : > { %v1210_v11 = vpop.f32.mrf.mxu3 }
 0x1f4   : > { %v1211_v30 = vadd.f32 %v1210_v11, %v1112_v32 }
 0x1f6   : > { %1220 = vst [vmem:[%s242_s8 + $0x38] sm:$0xff] %v1211_v30 }
 0x1f7   : > { %1493 = shalt.err (!%p1490_p5)
}
 0x1f8   : > { %s1547_s29 = smov 512   ;;  %s1548_s8 = smov 32  }
 0x1f9   : > { %1373 = dma.vmem_to_hbm [thread:$0]  (%p1619_p4), %s1237_s13, 1024, %s1239_s14, %s1222_s15, %s1547_s29, %s1547_s29, %s1548_s8  }
 0x1fa PF: > { %p1379_p6 = scmp.ge.s32.totalorder %s1544_s23, 2  ;;  %s1253_s9 = sand.u32 1, %s1524_s18  }
 0x1fb   : > { %s1254_s10 = scalar_lea.sflag [#allocation3], %s1253_s9 }
 0x1fc   : > { %p1376_p7 = pnand %p1379_p6, %p1626_p8 }
 0x1fe   : > { %p1377_p9 = pneg %p1376_p7 }
 0x200   : > { %1519 = dma.done.wait (%p1377_p9), %s1254_s10, 1024  }
 0x201   : > { %1521 = vsyncadd (%p1377_p9), %s1254_s10, 4294966272  ;;  %s18_s23 = sadd.s32 1, %s1544_s23   ;;  %s2444_s18 = smov %s1528_s19 }
 0x202   : > { %p15_p10 = scmp.ge.s32.totalorder %s18_s23, 4   ;;  %s2445_s19 = smov %s1532_s20 }
 0x203   : > { %s2446_s20 = smov %s1632_s6  ;;  %s2447_s21 = smov %s1540_s22 }
 0x204   : > { %s2448_s22 = smov %s2450_s26  ;;  %17 = sbr.rel (!%p15_p10) target bundleno = 4 (0x4), region = 75 }
 0x209   :  { %1260 = vsyncpa [#allocation3], 1 }
 0x20a   :  { %1262 = vsyncpa [#allocation3 + $0x1], 1 }

</bundles_post_ra>
